<compile_context>
chip_gen: v7x
topology: tpu7x:2x2x1
jax: 0.10.0
libtpu: 0.0.40
codegen_flags: <defaults>
</compile_context>

<pallas_src>
import functools

import jax
import jax.numpy as jnp
from jax import lax
from jax.experimental import pallas as pl
from jax.experimental.pallas import tpu as pltpu


def _round_up(x, m):
    return ((x + m - 1) // m) * m


def _cornn_chunk_kernel(inp_ref, wzy_ref, wo_ref, bo_ref, out_ref,
                        hy_ref, hz_ref, *,
                        dt, gamma, epsilon, t_chunk, seq_len, mask_tail,
                        unroll):
    """grid = (batch_tiles, time_chunks).

    One invocation runs `t_chunk` coRNN steps for one batch tile. hy/hz persist
    in VMEM scratch across the (inner, sequential) time-chunk axis; the readout
    is fused into the last time chunk on a lane-dense padded output.
    """
    tc = pl.program_id(1)

    @pl.when(tc == 0)
    def _init():
        hy_ref[...] = jnp.zeros_like(hy_ref)
        hz_ref[...] = jnp.zeros_like(hz_ref)

    wzy = wzy_ref[...]                      # (2H, H): rows [:H] act on hz, [H:] on hy
    t_base = tc * t_chunk

    def step(i, carry):
        hy, hz = carry
        inp_t = inp_ref[i].astype(jnp.float32)            # (Bt, H) per-step VMEM load
        cat = jnp.concatenate([hz, hy], axis=-1).astype(wzy.dtype)
        pre = jnp.dot(cat, wzy, preferred_element_type=jnp.float32) + inp_t
        hz_new = hz + dt * (jnp.tanh(pre) - gamma * hy - epsilon * hz)
        hy_new = hy + dt * hz_new
        if mask_tail:
            active = (t_base + i) < seq_len               # ignore padded tail steps
            hy_new = jnp.where(active, hy_new, hy)
            hz_new = jnp.where(active, hz_new, hz)
        return hy_new, hz_new

    hy, hz = lax.fori_loop(0, t_chunk, step, (hy_ref[...], hz_ref[...]),
                           unroll=unroll)
    hy_ref[...] = hy
    hz_ref[...] = hz

    @pl.when(tc == pl.num_programs(1) - 1)
    def _finalize():
        out_ref[...] = (jnp.dot(hy.astype(wo_ref.dtype), wo_ref[...],
                                preferred_element_type=jnp.float32)
                        + bo_ref[...]).astype(out_ref.dtype)


def rnn_model_forward(text, text_lengths, params, *, dt, gamma, epsilon,
                      compute_dtype=jnp.float32, time_chunk=128):
    """Pallas implementation of RNNModel.forward(text, text_lengths)."""
    del text_lengths                         # unused in the PyTorch forward as well
    emb_table = params["embedding"]          # (V, E), row pad_idx is zero
    wi = params["i2h_w"].T                   # (E, H)
    bi = params["i2h_b"]                     # (H,)
    h2h_w = params["h2h_w"]                  # (H, 2H)
    H = h2h_w.shape[0]
    wo = params["readout_w"].T               # (H, O)
    bo = params["readout_b"]                 # (O,)
    O = wo.shape[1]

    T, B = text.shape
    if T == 0:
        # Zero recurrence steps: hy stays zero -> readout is just the bias.
        return jnp.broadcast_to(bo[None, :].astype(jnp.float32), (B, O))

    # --- i2h hoisted out of the serial recurrence: one big matmul (glue in JAX).
    emb = jnp.take(emb_table, text, axis=0).astype(jnp.float32)      # (T, B, E)
    E = emb.shape[-1]
    inputs = (emb.reshape(T * B, E) @ wi + bi[None, :]).reshape(T, B, H)

    # --- pad to hardware tiles: B -> 8 (sublanes), H/O -> 128 (lanes).
    B_pad = _round_up(B, 8)
    H_pad = _round_up(H, 128)
    O_pad = _round_up(O, 128)
    itemsize = jnp.dtype(compute_dtype).itemsize

    # --- time chunking (chunk-sized double-buffered input DMA kept modest).
    t_chunk = max(1, min(int(time_chunk), T))
    bytes_per_step = B_pad * H_pad * itemsize
    max_steps = max(1, (8 * 1024 * 1024) // max(1, 2 * bytes_per_step))
    t_chunk = min(t_chunk, max_steps)
    n_chunks = -(-T // t_chunk)
    T_pad = n_chunks * t_chunk

    inputs_p = jnp.zeros((T_pad, B_pad, H_pad), compute_dtype)
    inputs_p = inputs_p.at[:T, :B, :H].set(inputs.astype(compute_dtype))

    # Fused h2h weight for concat([hz, hy]) @ Wzy  (== PyTorch h2h(cat(hz, hy))).
    wzy = h2h_w.T                                               # (2H, H)
    wzy_p = jnp.zeros((2 * H_pad, H_pad), compute_dtype)
    wzy_p = wzy_p.at[:H, :H].set(wzy[:H].astype(compute_dtype))              # hz half
    wzy_p = wzy_p.at[H_pad:H_pad + H, :H].set(wzy[H:].astype(compute_dtype))  # hy half

    wo_p = jnp.zeros((H_pad, O_pad), compute_dtype)
    wo_p = wo_p.at[:H, :O].set(wo.astype(compute_dtype))
    bo_p = jnp.zeros((1, O_pad), jnp.float32)
    bo_p = bo_p.at[0, :O].set(bo.astype(jnp.float32))

    # Single batch tile at these sizes; the axis is kept and marked "parallel"
    # so larger batches / v7x dual TensorCore split batch tiles across cores.
    B_tile = B_pad
    n_btiles = B_pad // B_tile

    unroll = True if t_chunk <= 16 else 8

    kernel = functools.partial(
        _cornn_chunk_kernel, dt=float(dt), gamma=float(gamma),
        epsilon=float(epsilon), t_chunk=t_chunk, seq_len=T,
        mask_tail=(T_pad != T), unroll=unroll)

    grid_spec = pltpu.PrefetchScalarGridSpec(
        num_scalar_prefetch=0,
        grid=(n_btiles, n_chunks),
        in_specs=[
            pl.BlockSpec((t_chunk, B_tile, H_pad), lambda b, t: (t, b, 0)),  # inputs chunk
            pl.BlockSpec((2 * H_pad, H_pad), lambda b, t: (0, 0)),           # Wzy (fused h2h)
            pl.BlockSpec((H_pad, O_pad), lambda b, t: (0, 0)),               # Wo
            pl.BlockSpec((1, O_pad), lambda b, t: (0, 0)),                   # bo
        ],
        out_specs=pl.BlockSpec((B_tile, O_pad), lambda b, t: (b, 0)),
        scratch_shapes=[
            pltpu.VMEM((B_tile, H_pad), jnp.float32),   # hy (f32 state)
            pltpu.VMEM((B_tile, H_pad), jnp.float32),   # hz (f32 state)
        ],
    )

    # Conservative scoped-VMEM setting: enough for double-buffered input chunks
    # + (double-buffered) constant weights + state, capped below v7x's 64 MiB.
    weight_bytes = (wzy_p.size + wo_p.size + bo_p.size) * itemsize
    chunk_bytes = t_chunk * B_tile * H_pad * itemsize
    vmem_budget = 4 * chunk_bytes + 2 * weight_bytes + 4 * B_tile * H_pad * 4 \
        + 2 * 1024 * 1024
    vmem_limit = int(min(max(32 * 1024 * 1024, vmem_budget), 48 * 1024 * 1024))

    out_p = pl.pallas_call(
        kernel,
        out_shape=jax.ShapeDtypeStruct((B_pad, O_pad), jnp.float32),
        grid_spec=grid_spec,
        compiler_params=pltpu.CompilerParams(
            dimension_semantics=("parallel", "arbitrary"),
            vmem_limit_bytes=vmem_limit),
    )(inputs_p, wzy_p, wo_p, bo_p)

    return out_p[:B, :O]


def rnn_model_reference(text, text_lengths, params, *, dt, gamma, epsilon):
    """Pure-JAX reference matching the PyTorch forward."""
    del text_lengths
    emb = jnp.take(params["embedding"], text, axis=0).astype(jnp.float32)
    wi = params["i2h_w"].T
    bi = params["i2h_b"]
    h2h_w = params["h2h_w"]
    H = h2h_w.shape[0]
    wz, wy = h2h_w[:, :H].T, h2h_w[:, H:].T
    inputs = emb @ wi + bi                               # (T, B, H)
    B = text.shape[1]
    hy = jnp.zeros((B, H), jnp.float32)
    hz = jnp.zeros((B, H), jnp.float32)

    def step(carry, inp_t):
        hy, hz = carry
        hz = hz + dt * (jnp.tanh(hz @ wz + hy @ wy + inp_t)
                        - gamma * hy - epsilon * hz)
        hy = hy + dt * hz
        return (hy, hz), None

    (hy, _), _ = lax.scan(step, (hy, hz), inputs)
    return hy @ params["readout_w"].T + params["readout_b"]


def init_params(key, vocab_size, emb_dim, hidden_dim, output_dim, pad_idx):
    k1, k2, k3, k4, k5, k6 = jax.random.split(key, 6)
    embedding = 0.1 * jax.random.normal(k1, (vocab_size, emb_dim), jnp.float32)
    embedding = embedding.at[pad_idx].set(0.0)   # padding_idx row zeroed
    return {
        "embedding": embedding,
        "i2h_w": 0.1 * jax.random.normal(k2, (hidden_dim, emb_dim), jnp.float32),
        "i2h_b": 0.1 * jax.random.normal(k3, (hidden_dim,), jnp.float32),
        "h2h_w": 0.1 * jax.random.normal(k4, (hidden_dim, 2 * hidden_dim),
                                         jnp.float32),
        "readout_w": 0.1 * jax.random.normal(k5, (output_dim, hidden_dim),
                                             jnp.float32),
        "readout_b": 0.1 * jax.random.normal(k6, (output_dim,), jnp.float32),
    }


if __name__ == "__main__":
    # Small shapes consistent with the module.
    VOCAB, EMB, HID, OUT = 50, 16, 32, 2
    T, B = 8, 4
    PAD_IDX = 1
    DT, GAMMA, EPSILON = 5.4e-2, 4.9, 4.8

    key = jax.random.PRNGKey(0)
    k_text, k_params = jax.random.split(key)
    text = jax.random.randint(k_text, (T, B), 0, VOCAB, dtype=jnp.int32)
    text_lengths = jnp.full((B,), T, dtype=jnp.int32)
    params = init_params(k_params, VOCAB, EMB, HID, OUT, PAD_IDX)

    ref = rnn_model_reference(text, text_lengths, params,
                              dt=DT, gamma=GAMMA, epsilon=EPSILON)

    # f32 path: must match the reference tightly.
    out_f32 = jax.block_until_ready(rnn_model_forward(
        text, text_lengths, params, dt=DT, gamma=GAMMA, epsilon=EPSILON,
        compute_dtype=jnp.float32))
    assert out_f32.shape == (B, OUT)
    assert jnp.allclose(out_f32, ref, atol=1e-5, rtol=1e-5), (out_f32, ref)

    # bf16 weights/inputs (f32 state & accumulation): looser tolerance.
    out_bf16 = jax.block_until_ready(rnn_model_forward(
        text, text_lengths, params, dt=DT, gamma=GAMMA, epsilon=EPSILON,
        compute_dtype=jnp.bfloat16))
    assert out_bf16.shape == (B, OUT)
    assert jnp.allclose(out_bf16, ref, atol=2e-2, rtol=2e-2), (out_bf16, ref)

    print("KERNEL_OK")
</pallas_src>

<mosaic_0001>
module attributes {stable_mosaic.version = 11 : i64} {
  func.func @_cornn_chunk_kernel(%arg0: i32, %arg1: i32, %arg2: memref<8x8x128xf32, #tpu.memory_space<vmem>>, %arg3: memref<256x128xf32, #tpu.memory_space<vmem>>, %arg4: memref<128x128xf32, #tpu.memory_space<vmem>>, %arg5: memref<1x128xf32, #tpu.memory_space<vmem>>, %arg6: memref<8x128xf32, #tpu.memory_space<vmem>>, %arg7: memref<8x128xf32, #tpu.memory_space<vmem>>, %arg8: memref<8x128xf32, #tpu.memory_space<vmem>>) attributes {dimension_semantics = [#tpu.dimension_semantics<parallel>, #tpu.dimension_semantics<arbitrary>], iteration_bounds = array<i64: 1, 1>, scalar_prefetch = 0 : i64, scratch_operands = 2 : i64, tpu.core_type = #tpu.core_type<tc>, window_params = [{transform_indices = @transform_0, window_bounds = array<i64: 8, 8, 128>}, {pipeline_mode = #tpu.pipeline_mode<synchronous>, transform_indices = @transform_1, window_bounds = array<i64: 256, 128>}, {pipeline_mode = #tpu.pipeline_mode<synchronous>, transform_indices = @transform_2, window_bounds = array<i64: 128, 128>}, {pipeline_mode = #tpu.pipeline_mode<synchronous>, transform_indices = @transform_3, window_bounds = array<i64: 1, 128>}, {transform_indices = @transform_4, window_bounds = array<i64: 8, 128>}]} {
    %c0_i32 = arith.constant 0 : i32
    %0 = arith.cmpi eq, %arg1, %c0_i32 : i32
    %1 = arith.extui %0 : i1 to i32
    %c0_i32_0 = arith.constant 0 : i32
    %2 = arith.cmpi ne, %1, %c0_i32_0 : i32
    scf.if %2 {
      %cst_68 = arith.constant 0.000000e+00 : f32
      %163 = vector.broadcast %cst_68 : f32 to vector<8x128xf32>
      %c0_69 = arith.constant 0 : index
      %c0_70 = arith.constant 0 : index
      %164 = vector.load %arg7[%c0_69, %c0_70] : memref<8x128xf32, #tpu.memory_space<vmem>>, vector<8x128xf32>
      tpu.vector_store %arg7[%c0_69, %c0_70], %163 {strides = array<i32>} : memref<8x128xf32, #tpu.memory_space<vmem>>, vector<8x128xf32>,
      %cst_71 = arith.constant 0.000000e+00 : f32
      %165 = vector.broadcast %cst_71 : f32 to vector<8x128xf32>
      %c0_72 = arith.constant 0 : index
      %c0_73 = arith.constant 0 : index
      %166 = vector.load %arg8[%c0_72, %c0_73] : memref<8x128xf32, #tpu.memory_space<vmem>>, vector<8x128xf32>
      tpu.vector_store %arg8[%c0_72, %c0_73], %165 {strides = array<i32>} : memref<8x128xf32, #tpu.memory_space<vmem>>, vector<8x128xf32>,
    } else {
    }
    %c0 = arith.constant 0 : index
    %c0_1 = arith.constant 0 : index
    %3 = vector.load %arg3[%c0, %c0_1] : memref<256x128xf32, #tpu.memory_space<vmem>>, vector<256x128xf32>
    %c0_2 = arith.constant 0 : index
    %c0_3 = arith.constant 0 : index
    %4 = vector.load %arg7[%c0_2, %c0_3] : memref<8x128xf32, #tpu.memory_space<vmem>>, vector<8x128xf32>
    %c0_4 = arith.constant 0 : index
    %c0_5 = arith.constant 0 : index
    %5 = vector.load %arg8[%c0_4, %c0_5] : memref<8x128xf32, #tpu.memory_space<vmem>>, vector<8x128xf32>
    %c0_i32_6 = arith.constant 0 : i32
    %6 = arith.index_cast %c0_i32_6 : i32 to index
    %c0_7 = arith.constant 0 : index
    %c0_8 = arith.constant 0 : index
    %7 = vector.load %arg2[%6, %c0_7, %c0_8] : memref<8x8x128xf32, #tpu.memory_space<vmem>>, vector<1x8x128xf32>
    %8 = vector.shape_cast %7 : vector<1x8x128xf32> to vector<8x128xf32>
    %9 = tpu.concatenate %5, %4 in 1 : vector<8x128xf32>, vector<8x128xf32> -> vector<8x256xf32>
    %cst = arith.constant dense<0.000000e+00> : vector<8x128xf32>
    %10 = tpu.matmul %9, %3, %cst {dimension_numbers = #tpu.dot_dimension_numbers<[1], [0], [0], [1], [0, 0, 1, 1], [], []>} : vector<8x256xf32>, vector<256x128xf32>, vector<8x128xf32> -> vector<8x128xf32>
    %11 = arith.addf %10, %8 : vector<8x128xf32>
    %12 = math.tanh %11 : vector<8x128xf32>
    %cst_9 = arith.constant 4.900000e+00 : f32
    %13 = vector.broadcast %cst_9 : f32 to vector<8x128xf32>
    %14 = arith.mulf %13, %4 : vector<8x128xf32>
    %15 = arith.subf %12, %14 : vector<8x128xf32>
    %cst_10 = arith.constant 4.800000e+00 : f32
    %16 = vector.broadcast %cst_10 : f32 to vector<8x128xf32>
    %17 = arith.mulf %16, %5 : vector<8x128xf32>
    %18 = arith.subf %15, %17 : vector<8x128xf32>
    %cst_11 = arith.constant 5.400000e-02 : f32
    %19 = vector.broadcast %cst_11 : f32 to vector<8x128xf32>
    %20 = arith.mulf %19, %18 : vector<8x128xf32>
    %21 = arith.addf %5, %20 : vector<8x128xf32>
    %cst_12 = arith.constant 5.400000e-02 : f32
    %22 = vector.broadcast %cst_12 : f32 to vector<8x128xf32>
    %23 = arith.mulf %22, %21 : vector<8x128xf32>
    %24 = arith.addf %4, %23 : vector<8x128xf32>
    %c1_i32 = arith.constant 1 : i32
    %25 = arith.index_cast %c1_i32 : i32 to index
    %c0_13 = arith.constant 0 : index
    %c0_14 = arith.constant 0 : index
    %26 = vector.load %arg2[%25, %c0_13, %c0_14] : memref<8x8x128xf32, #tpu.memory_space<vmem>>, vector<1x8x128xf32>
    %27 = vector.shape_cast %26 : vector<1x8x128xf32> to vector<8x128xf32>
    %28 = tpu.concatenate %21, %24 in 1 : vector<8x128xf32>, vector<8x128xf32> -> vector<8x256xf32>
    %cst_15 = arith.constant dense<0.000000e+00> : vector<8x128xf32>
    %29 = tpu.matmul %28, %3, %cst_15 {dimension_numbers = #tpu.dot_dimension_numbers<[1], [0], [0], [1], [0, 0, 1, 1], [], []>} : vector<8x256xf32>, vector<256x128xf32>, vector<8x128xf32> -> vector<8x128xf32>
    %30 = arith.addf %29, %27 : vector<8x128xf32>
    %31 = math.tanh %30 : vector<8x128xf32>
    %cst_16 = arith.constant 4.900000e+00 : f32
    %32 = vector.broadcast %cst_16 : f32 to vector<8x128xf32>
    %33 = arith.mulf %32, %24 : vector<8x128xf32>
    %34 = arith.subf %31, %33 : vector<8x128xf32>
    %cst_17 = arith.constant 4.800000e+00 : f32
    %35 = vector.broadcast %cst_17 : f32 to vector<8x128xf32>
    %36 = arith.mulf %35, %21 : vector<8x128xf32>
    %37 = arith.subf %34, %36 : vector<8x128xf32>
    %cst_18 = arith.constant 5.400000e-02 : f32
    %38 = vector.broadcast %cst_18 : f32 to vector<8x128xf32>
    %39 = arith.mulf %38, %37 : vector<8x128xf32>
    %40 = arith.addf %21, %39 : vector<8x128xf32>
    %cst_19 = arith.constant 5.400000e-02 : f32
    %41 = vector.broadcast %cst_19 : f32 to vector<8x128xf32>
    %42 = arith.mulf %41, %40 : vector<8x128xf32>
    %43 = arith.addf %24, %42 : vector<8x128xf32>
    %c2_i32 = arith.constant 2 : i32
    %44 = arith.index_cast %c2_i32 : i32 to index
    %c0_20 = arith.constant 0 : index
    %c0_21 = arith.constant 0 : index
    %45 = vector.load %arg2[%44, %c0_20, %c0_21] : memref<8x8x128xf32, #tpu.memory_space<vmem>>, vector<1x8x128xf32>
    %46 = vector.shape_cast %45 : vector<1x8x128xf32> to vector<8x128xf32>
    %47 = tpu.concatenate %40, %43 in 1 : vector<8x128xf32>, vector<8x128xf32> -> vector<8x256xf32>
    %cst_22 = arith.constant dense<0.000000e+00> : vector<8x128xf32>
    %48 = tpu.matmul %47, %3, %cst_22 {dimension_numbers = #tpu.dot_dimension_numbers<[1], [0], [0], [1], [0, 0, 1, 1], [], []>} : vector<8x256xf32>, vector<256x128xf32>, vector<8x128xf32> -> vector<8x128xf32>
    %49 = arith.addf %48, %46 : vector<8x128xf32>
    %50 = math.tanh %49 : vector<8x128xf32>
    %cst_23 = arith.constant 4.900000e+00 : f32
    %51 = vector.broadcast %cst_23 : f32 to vector<8x128xf32>
    %52 = arith.mulf %51, %43 : vector<8x128xf32>
    %53 = arith.subf %50, %52 : vector<8x128xf32>
    %cst_24 = arith.constant 4.800000e+00 : f32
    %54 = vector.broadcast %cst_24 : f32 to vector<8x128xf32>
    %55 = arith.mulf %54, %40 : vector<8x128xf32>
    %56 = arith.subf %53, %55 : vector<8x128xf32>
    %cst_25 = arith.constant 5.400000e-02 : f32
    %57 = vector.broadcast %cst_25 : f32 to vector<8x128xf32>
    %58 = arith.mulf %57, %56 : vector<8x128xf32>
    %59 = arith.addf %40, %58 : vector<8x128xf32>
    %cst_26 = arith.constant 5.400000e-02 : f32
    %60 = vector.broadcast %cst_26 : f32 to vector<8x128xf32>
    %61 = arith.mulf %60, %59 : vector<8x128xf32>
    %62 = arith.addf %43, %61 : vector<8x128xf32>
    %c3_i32 = arith.constant 3 : i32
    %63 = arith.index_cast %c3_i32 : i32 to index
    %c0_27 = arith.constant 0 : index
    %c0_28 = arith.constant 0 : index
    %64 = vector.load %arg2[%63, %c0_27, %c0_28] : memref<8x8x128xf32, #tpu.memory_space<vmem>>, vector<1x8x128xf32>
    %65 = vector.shape_cast %64 : vector<1x8x128xf32> to vector<8x128xf32>
    %66 = tpu.concatenate %59, %62 in 1 : vector<8x128xf32>, vector<8x128xf32> -> vector<8x256xf32>
    %cst_29 = arith.constant dense<0.000000e+00> : vector<8x128xf32>
    %67 = tpu.matmul %66, %3, %cst_29 {dimension_numbers = #tpu.dot_dimension_numbers<[1], [0], [0], [1], [0, 0, 1, 1], [], []>} : vector<8x256xf32>, vector<256x128xf32>, vector<8x128xf32> -> vector<8x128xf32>
    %68 = arith.addf %67, %65 : vector<8x128xf32>
    %69 = math.tanh %68 : vector<8x128xf32>
    %cst_30 = arith.constant 4.900000e+00 : f32
    %70 = vector.broadcast %cst_30 : f32 to vector<8x128xf32>
    %71 = arith.mulf %70, %62 : vector<8x128xf32>
    %72 = arith.subf %69, %71 : vector<8x128xf32>
    %cst_31 = arith.constant 4.800000e+00 : f32
    %73 = vector.broadcast %cst_31 : f32 to vector<8x128xf32>
    %74 = arith.mulf %73, %59 : vector<8x128xf32>
    %75 = arith.subf %72, %74 : vector<8x128xf32>
    %cst_32 = arith.constant 5.400000e-02 : f32
    %76 = vector.broadcast %cst_32 : f32 to vector<8x128xf32>
    %77 = arith.mulf %76, %75 : vector<8x128xf32>
    %78 = arith.addf %59, %77 : vector<8x128xf32>
    %cst_33 = arith.constant 5.400000e-02 : f32
    %79 = vector.broadcast %cst_33 : f32 to vector<8x128xf32>
    %80 = arith.mulf %79, %78 : vector<8x128xf32>
    %81 = arith.addf %62, %80 : vector<8x128xf32>
    %c4_i32 = arith.constant 4 : i32
    %82 = arith.index_cast %c4_i32 : i32 to index
    %c0_34 = arith.constant 0 : index
    %c0_35 = arith.constant 0 : index
    %83 = vector.load %arg2[%82, %c0_34, %c0_35] : memref<8x8x128xf32, #tpu.memory_space<vmem>>, vector<1x8x128xf32>
    %84 = vector.shape_cast %83 : vector<1x8x128xf32> to vector<8x128xf32>
    %85 = tpu.concatenate %78, %81 in 1 : vector<8x128xf32>, vector<8x128xf32> -> vector<8x256xf32>
    %cst_36 = arith.constant dense<0.000000e+00> : vector<8x128xf32>
    %86 = tpu.matmul %85, %3, %cst_36 {dimension_numbers = #tpu.dot_dimension_numbers<[1], [0], [0], [1], [0, 0, 1, 1], [], []>} : vector<8x256xf32>, vector<256x128xf32>, vector<8x128xf32> -> vector<8x128xf32>
    %87 = arith.addf %86, %84 : vector<8x128xf32>
    %88 = math.tanh %87 : vector<8x128xf32>
    %cst_37 = arith.constant 4.900000e+00 : f32
    %89 = vector.broadcast %cst_37 : f32 to vector<8x128xf32>
    %90 = arith.mulf %89, %81 : vector<8x128xf32>
    %91 = arith.subf %88, %90 : vector<8x128xf32>
    %cst_38 = arith.constant 4.800000e+00 : f32
    %92 = vector.broadcast %cst_38 : f32 to vector<8x128xf32>
    %93 = arith.mulf %92, %78 : vector<8x128xf32>
    %94 = arith.subf %91, %93 : vector<8x128xf32>
    %cst_39 = arith.constant 5.400000e-02 : f32
    %95 = vector.broadcast %cst_39 : f32 to vector<8x128xf32>
    %96 = arith.mulf %95, %94 : vector<8x128xf32>
    %97 = arith.addf %78, %96 : vector<8x128xf32>
    %cst_40 = arith.constant 5.400000e-02 : f32
    %98 = vector.broadcast %cst_40 : f32 to vector<8x128xf32>
    %99 = arith.mulf %98, %97 : vector<8x128xf32>
    %100 = arith.addf %81, %99 : vector<8x128xf32>
    %c5_i32 = arith.constant 5 : i32
    %101 = arith.index_cast %c5_i32 : i32 to index
    %c0_41 = arith.constant 0 : index
    %c0_42 = arith.constant 0 : index
    %102 = vector.load %arg2[%101, %c0_41, %c0_42] : memref<8x8x128xf32, #tpu.memory_space<vmem>>, vector<1x8x128xf32>
    %103 = vector.shape_cast %102 : vector<1x8x128xf32> to vector<8x128xf32>
    %104 = tpu.concatenate %97, %100 in 1 : vector<8x128xf32>, vector<8x128xf32> -> vector<8x256xf32>
    %cst_43 = arith.constant dense<0.000000e+00> : vector<8x128xf32>
    %105 = tpu.matmul %104, %3, %cst_43 {dimension_numbers = #tpu.dot_dimension_numbers<[1], [0], [0], [1], [0, 0, 1, 1], [], []>} : vector<8x256xf32>, vector<256x128xf32>, vector<8x128xf32> -> vector<8x128xf32>
    %106 = arith.addf %105, %103 : vector<8x128xf32>
    %107 = math.tanh %106 : vector<8x128xf32>
    %cst_44 = arith.constant 4.900000e+00 : f32
    %108 = vector.broadcast %cst_44 : f32 to vector<8x128xf32>
    %109 = arith.mulf %108, %100 : vector<8x128xf32>
    %110 = arith.subf %107, %109 : vector<8x128xf32>
    %cst_45 = arith.constant 4.800000e+00 : f32
    %111 = vector.broadcast %cst_45 : f32 to vector<8x128xf32>
    %112 = arith.mulf %111, %97 : vector<8x128xf32>
    %113 = arith.subf %110, %112 : vector<8x128xf32>
    %cst_46 = arith.constant 5.400000e-02 : f32
    %114 = vector.broadcast %cst_46 : f32 to vector<8x128xf32>
    %115 = arith.mulf %114, %113 : vector<8x128xf32>
    %116 = arith.addf %97, %115 : vector<8x128xf32>
    %cst_47 = arith.constant 5.400000e-02 : f32
    %117 = vector.broadcast %cst_47 : f32 to vector<8x128xf32>
    %118 = arith.mulf %117, %116 : vector<8x128xf32>
    %119 = arith.addf %100, %118 : vector<8x128xf32>
    %c6_i32 = arith.constant 6 : i32
    %120 = arith.index_cast %c6_i32 : i32 to index
    %c0_48 = arith.constant 0 : index
    %c0_49 = arith.constant 0 : index
    %121 = vector.load %arg2[%120, %c0_48, %c0_49] : memref<8x8x128xf32, #tpu.memory_space<vmem>>, vector<1x8x128xf32>
    %122 = vector.shape_cast %121 : vector<1x8x128xf32> to vector<8x128xf32>
    %123 = tpu.concatenate %116, %119 in 1 : vector<8x128xf32>, vector<8x128xf32> -> vector<8x256xf32>
    %cst_50 = arith.constant dense<0.000000e+00> : vector<8x128xf32>
    %124 = tpu.matmul %123, %3, %cst_50 {dimension_numbers = #tpu.dot_dimension_numbers<[1], [0], [0], [1], [0, 0, 1, 1], [], []>} : vector<8x256xf32>, vector<256x128xf32>, vector<8x128xf32> -> vector<8x128xf32>
    %125 = arith.addf %124, %122 : vector<8x128xf32>
    %126 = math.tanh %125 : vector<8x128xf32>
    %cst_51 = arith.constant 4.900000e+00 : f32
    %127 = vector.broadcast %cst_51 : f32 to vector<8x128xf32>
    %128 = arith.mulf %127, %119 : vector<8x128xf32>
    %129 = arith.subf %126, %128 : vector<8x128xf32>
    %cst_52 = arith.constant 4.800000e+00 : f32
    %130 = vector.broadcast %cst_52 : f32 to vector<8x128xf32>
    %131 = arith.mulf %130, %116 : vector<8x128xf32>
    %132 = arith.subf %129, %131 : vector<8x128xf32>
    %cst_53 = arith.constant 5.400000e-02 : f32
    %133 = vector.broadcast %cst_53 : f32 to vector<8x128xf32>
    %134 = arith.mulf %133, %132 : vector<8x128xf32>
    %135 = arith.addf %116, %134 : vector<8x128xf32>
    %cst_54 = arith.constant 5.400000e-02 : f32
    %136 = vector.broadcast %cst_54 : f32 to vector<8x128xf32>
    %137 = arith.mulf %136, %135 : vector<8x128xf32>
    %138 = arith.addf %119, %137 : vector<8x128xf32>
    %c7_i32 = arith.constant 7 : i32
    %139 = arith.index_cast %c7_i32 : i32 to index
    %c0_55 = arith.constant 0 : index
    %c0_56 = arith.constant 0 : index
    %140 = vector.load %arg2[%139, %c0_55, %c0_56] : memref<8x8x128xf32, #tpu.memory_space<vmem>>, vector<1x8x128xf32>
    %141 = vector.shape_cast %140 : vector<1x8x128xf32> to vector<8x128xf32>
    %142 = tpu.concatenate %135, %138 in 1 : vector<8x128xf32>, vector<8x128xf32> -> vector<8x256xf32>
    %cst_57 = arith.constant dense<0.000000e+00> : vector<8x128xf32>
    %143 = tpu.matmul %142, %3, %cst_57 {dimension_numbers = #tpu.dot_dimension_numbers<[1], [0], [0], [1], [0, 0, 1, 1], [], []>} : vector<8x256xf32>, vector<256x128xf32>, vector<8x128xf32> -> vector<8x128xf32>
    %144 = arith.addf %143, %141 : vector<8x128xf32>
    %145 = math.tanh %144 : vector<8x128xf32>
    %cst_58 = arith.constant 4.900000e+00 : f32
    %146 = vector.broadcast %cst_58 : f32 to vector<8x128xf32>
    %147 = arith.mulf %146, %138 : vector<8x128xf32>
    %148 = arith.subf %145, %147 : vector<8x128xf32>
    %cst_59 = arith.constant 4.800000e+00 : f32
    %149 = vector.broadcast %cst_59 : f32 to vector<8x128xf32>
    %150 = arith.mulf %149, %135 : vector<8x128xf32>
    %151 = arith.subf %148, %150 : vector<8x128xf32>
    %cst_60 = arith.constant 5.400000e-02 : f32
    %152 = vector.broadcast %cst_60 : f32 to vector<8x128xf32>
    %153 = arith.mulf %152, %151 : vector<8x128xf32>
    %154 = arith.addf %135, %153 : vector<8x128xf32>
    %cst_61 = arith.constant 5.400000e-02 : f32
    %155 = vector.broadcast %cst_61 : f32 to vector<8x128xf32>
    %156 = arith.mulf %155, %154 : vector<8x128xf32>
    %157 = arith.addf %138, %156 : vector<8x128xf32>
    %c8_i32 = arith.constant 8 : i32
    %c0_62 = arith.constant 0 : index
    %c0_63 = arith.constant 0 : index
    %158 = vector.load %arg7[%c0_62, %c0_63] : memref<8x128xf32, #tpu.memory_space<vmem>>, vector<8x128xf32>
    tpu.vector_store %arg7[%c0_62, %c0_63], %157 {strides = array<i32>} : memref<8x128xf32, #tpu.memory_space<vmem>>, vector<8x128xf32>,
    %c0_64 = arith.constant 0 : index
    %c0_65 = arith.constant 0 : index
    %159 = vector.load %arg8[%c0_64, %c0_65] : memref<8x128xf32, #tpu.memory_space<vmem>>, vector<8x128xf32>
    tpu.vector_store %arg8[%c0_64, %c0_65], %154 {strides = array<i32>} : memref<8x128xf32, #tpu.memory_space<vmem>>, vector<8x128xf32>,
    %c0_i32_66 = arith.constant 0 : i32
    %160 = arith.cmpi eq, %arg1, %c0_i32_66 : i32
    %161 = arith.extui %160 : i1 to i32
    %c0_i32_67 = arith.constant 0 : i32
    %162 = arith.cmpi ne, %161, %c0_i32_67 : i32
    scf.if %162 {
      %c0_68 = arith.constant 0 : index
      %c0_69 = arith.constant 0 : index
      %163 = vector.load %arg4[%c0_68, %c0_69] : memref<128x128xf32, #tpu.memory_space<vmem>>, vector<128x128xf32>
      %cst_70 = arith.constant dense<0.000000e+00> : vector<8x128xf32>
      %164 = tpu.matmul %157, %163, %cst_70 {dimension_numbers = #tpu.dot_dimension_numbers<[1], [0], [0], [1], [0, 0, 1, 1], [], []>} : vector<8x128xf32>, vector<128x128xf32>, vector<8x128xf32> -> vector<8x128xf32>
      %c0_71 = arith.constant 0 : index
      %c0_72 = arith.constant 0 : index
      %165 = vector.load %arg5[%c0_71, %c0_72] : memref<1x128xf32, #tpu.memory_space<vmem>>, vector<1x128xf32>
      %166 = vector.broadcast %165 : vector<1x128xf32> to vector<8x128xf32>
      %167 = arith.addf %164, %166 : vector<8x128xf32>
      %c0_73 = arith.constant 0 : index
      %c0_74 = arith.constant 0 : index
      %168 = vector.load %arg6[%c0_73, %c0_74] : memref<8x128xf32, #tpu.memory_space<vmem>>, vector<8x128xf32>
      tpu.vector_store %arg6[%c0_73, %c0_74], %167 {strides = array<i32>} : memref<8x128xf32, #tpu.memory_space<vmem>>, vector<8x128xf32>,
    } else {
    }
    return
  }
  func.func @transform_0(%arg0: i32, %arg1: i32) -> (i32, i32, i32) {
    %c0_i32 = arith.constant 0 : i32
    %c0_i32_0 = arith.constant 0 : i32
    return %arg1, %arg0, %c0_i32 : i32, i32, i32
  }
  func.func @transform_1(%arg0: i32, %arg1: i32) -> (i32, i32) {
    %c0_i32 = arith.constant 0 : i32
    %c0_i32_0 = arith.constant 0 : i32
    %c0_i32_1 = arith.constant 0 : i32
    return %c0_i32, %c0_i32_0 : i32, i32
  }
  func.func @transform_2(%arg0: i32, %arg1: i32) -> (i32, i32) {
    %c0_i32 = arith.constant 0 : i32
    %c0_i32_0 = arith.constant 0 : i32
    %c0_i32_1 = arith.constant 0 : i32
    return %c0_i32, %c0_i32_0 : i32, i32
  }
  func.func @transform_3(%arg0: i32, %arg1: i32) -> (i32, i32) {
    %c0_i32 = arith.constant 0 : i32
    %c0_i32_0 = arith.constant 0 : i32
    %c0_i32_1 = arith.constant 0 : i32
    return %c0_i32, %c0_i32_0 : i32, i32
  }
  func.func @transform_4(%arg0: i32, %arg1: i32) -> (i32, i32) {
    %c0_i32 = arith.constant 0 : i32
    %c0_i32_0 = arith.constant 0 : i32
    return %arg0, %c0_i32 : i32, i32
  }
}

</mosaic_0001>

<bundles_post_ra>
// kernel: tpu_custom_call.1
= control target key start
LH: loop header
LB: loop body
LE: loop exit
PB: predicated region body
PF: predicated region fallthrough
CT: control target
= control target key end

     0   :  { %9 = vsyncpa [#allocation5], 0  ;;  %s1857_s0 = inlined_call_operand.hbm [shape: f32[8,8,128], index: 0, kind: input, shape index: {}]   ;;  %s1858_s1 = inlined_call_operand.hbm [shape: f32[256,128], index: 1, kind: input, shape index: {}]   ;;  %s1859_s2 = inlined_call_operand.hbm [shape: f32[128,128], index: 2, kind: input, shape index: {}]   ;;  %s1860_s3 = inlined_call_operand.vmem [shape: f32[1,128], index: 3, kind: input, shape index: {}]   ;;  %s1861_s4 = inlined_call_operand.hbm [shape: f32[8,128], index: 4, kind: output, shape index: {}]  }
   0x1   :  { %10 = vsyncpa [#allocation8], 0 }
   0x2   :  { %11 = vsyncpa [#allocation6], 0  ;;  %s1593_s15 = smov [#allocation7]   ;;  %s1594_s17 = smov [#allocation4]  }
   0x3   :  { %s29_s16 = sshll.u32 %s1593_s15, 4  ;;  %s17_s18 = sshll.u32 %s1594_s17, 4  ;;  %s30_s16 = int_to_ptr.vmem [resolvable:$true] %s29_s16  ;;  %s1627_s18 = int_to_ptr.vmem [resolvable:$true] %s17_s18 }
   0x4   :  { %s1499_s21 = scalar_lea.hbm %s1858_s1, 4096 }
   0x5   :  { %p1500_p0 = scmp.ne.s32.totalorder %s1858_s1, %s1499_s21  ;;  %p1503_p1 = scmp.lt.u32.totalorder %s1499_s21, %s1858_s1 }
   0x7   :  { %p1505_p2 = pnand %p1503_p1, %p1500_p0 }
   0x9   :  { %1508 = shalt.err (!%p1505_p2)
}
   0xa   :  { %s1509_s26 = scalar_lea.vmem %s30_s16, 4096  ;;  %p1514_p4 = scmp.lt.s32.totalorder %s30_s16, %s30_s16 }
   0xb   :  { %p1510_p3 = scmp.ne.s32.totalorder %s30_s16, %s1509_s26  ;;  %p1515_p5 = scmp.lt.s32.totalorder %s1509_s26, %s1509_s26 }
   0xd   :  { %p1516_p6 = por %p1515_p5, %p1514_p4 }
   0xf   :  { %p1517_p7 = pnand %p1516_p6, %p1510_p3 }
  0x11   :  { %1520 = shalt.err (!%p1517_p7)
}
  0x12   :  { %s1595_s27 = smov 128   ;;  %s1596_s28 = smov 8  }
  0x13   :  { %35 = dma.hbm_to_vmem [thread:$0]  %s1858_s1, 4096, %s30_s16, [#allocation8], %s1595_s27, %s1595_s27, %s1596_s28  }
  0x14   :  { %s1521_s7 = scalar_lea.hbm %s1857_s0, 1024 }
  0x15   :  { %p1522_p8 = scmp.ne.s32.totalorder %s1857_s0, %s1521_s7  ;;  %p1525_p9 = scmp.lt.u32.totalorder %s1521_s7, %s1857_s0 }
  0x17   :  { %p1527_p10 = pnand %p1525_p9, %p1522_p8 }
  0x19   :  { %1530 = shalt.err (!%p1527_p10)
}
  0x1a   :  { %s1531_s12 = scalar_lea.vmem %s1627_s18, 1024  ;;  %p1536_p12 = scmp.lt.s32.totalorder %s1627_s18, %s1627_s18 }
  0x1b   :  { %p1532_p11 = scmp.ne.s32.totalorder %s1627_s18, %s1531_s12  ;;  %p1537_p13 = scmp.lt.s32.totalorder %s1531_s12, %s1531_s12 }
  0x1d   :  { %p1538_p0 = por %p1537_p13, %p1536_p12 }
  0x1f   :  { %p1539_p1 = pnand %p1538_p0, %p1532_p11 }
  0x21   :  { %1542 = shalt.err (!%p1539_p1)
}
  0x22   :  { %23 = dma.hbm_to_vmem [thread:$0]  %s1857_s0, 1024, %s1627_s18, [#allocation5], %s1595_s27, %s1595_s27, %s1596_s28  }
  0x23   :  { %s1597_s14 = smov [#allocation9]   ;;  %s1543_s19 = scalar_lea.hbm %s1859_s2, 2048 }
  0x24   :  { %s41_s15 = sshll.u32 %s1597_s14, 4  ;;  %p1544_p2 = scmp.ne.s32.totalorder %s1859_s2, %s1543_s19  ;;  %s42_s15 = int_to_ptr.vmem [resolvable:$true] %s41_s15 }
  0x25   :  { %p1547_p3 = scmp.lt.u32.totalorder %s1543_s19, %s1859_s2 }
  0x27   :  { %p1549_p4 = pnand %p1547_p3, %p1544_p2 }
  0x29   :  { %1552 = shalt.err (!%p1549_p4)
}
  0x2a   :  { %s1553_s24 = scalar_lea.vmem %s42_s15, 2048  ;;  %p1558_p6 = scmp.lt.s32.totalorder %s42_s15, %s42_s15 }
  0x2b   :  { %p1554_p5 = scmp.ne.s32.totalorder %s42_s15, %s1553_s24  ;;  %p1559_p7 = scmp.lt.s32.totalorder %s1553_s24, %s1553_s24 }
  0x2d   :  { %p1560_p8 = por %p1559_p7, %p1558_p6 }
  0x2f   :  { %p1561_p9 = pnand %p1560_p8, %p1554_p5 }
  0x31   :  { %1564 = shalt.err (!%p1561_p9)
}
  0x32   :  { %47 = dma.hbm_to_vmem [thread:$0]  %s1859_s2, 2048, %s42_s15, [#allocation8], %s1595_s27, %s1595_s27, %s1596_s28  }
  0x33   :  { %1587 = dma.done.wait [#allocation5], 1024  }
  0x34   :  { %1588 = vsyncadd [#allocation5], 4294966272 }
  0x35   :  { %1589 = dma.done.wait [#allocation8], 6144  }
  0x36   :  { %1590 = vsyncadd [#allocation8], 4294961152  ;;  %v1598_v0 = vmov 0.0   ;;  %v81_v1 = vld [vmem:[#allocation7 + $0x80] sm:$0xff]  ;;  %v82_v2 = vld [vmem:[#allocation7 + $0x88] sm:$0xff]  ;;  %vm1600_vm0 = vmmov 0  }
  0x37   :  { %164 = vmatprep.mubr.f32.mxu0 %v1598_v0  ;;  %v65_v3 = vld [vmem:[#allocation7] sm:$0xff]  ;;  %v1680_v4 = vpack.c.bf16 %v82_v2, %v81_v1  ;;  %v66_v5 = vld [vmem:[#allocation7 + $0x8] sm:$0xff]  ;;  %v83_v6 = vld [vmem:[#allocation7 + $0x90] sm:$0xff]  ;;  %s1601_s26 = smov [#allocation10]  }
  0x38   :  { %v84_v7 = vld [vmem:[#allocation7 + $0x98] sm:$0xff]  ;;  %v1682_v8 = vpack.c.bf16 %v66_v5, %v65_v3  ;;  %v67_v10 = vld [vmem:[#allocation7 + $0x10] sm:$0xff]  ;;  %v85_v12 = vld [vmem:[#allocation7 + $0xa0] sm:$0xff]  ;;  %s851_s27 = sshll.u32 %s1601_s26, 4  ;;  %s852_s27 = int_to_ptr.vmem [resolvable:$true] %s851_s27 }
  0x39   :  { %v1684_v9 = vpack.c.bf16 %v84_v7, %v83_v6  ;;  %v68_v11 = vld [vmem:[#allocation7 + $0x18] sm:$0xff]  ;;  %1195 = vmatprep.subr.bf16.mxu0 %v1680_v4  ;;  %v86_v13 = vld [vmem:[#allocation7 + $0xa8] sm:$0xff]  ;;  %1227 = vmatprep.subr.bf16.mxu1 %v1680_v4  ;;  %v69_v16 = vld [vmem:[#allocation7 + $0x20] sm:$0xff]  ;;  %s1565_s28 = scalar_lea.vmem %s852_s27, 128  ;;  %p1570_p11 = scmp.lt.s32.totalorder %s852_s27, %s852_s27 }
  0x3a   :  { %1197 = vmatpush3.bf16.msra.mxu0 %v1682_v8  ;;  %v1689_v14 = vpack.c.bf16 %v68_v11, %v67_v10  ;;  %1229 = vmatpush3.bf16.msra.mxu1 %v1682_v8  ;;  %v1693_v15 = vpack.c.bf16 %v86_v13, %v85_v12  ;;  %v70_v17 = vld [vmem:[#allocation7 + $0x28] sm:$0xff]  ;;  %v87_v18 = vld [vmem:[#allocation7 + $0xb0] sm:$0xff]  ;;  %v88_v19 = vld [vmem:[#allocation7 + $0xb8] sm:$0xff]  ;;  %p1566_p10 = scmp.ne.s32.totalorder %s852_s27, %s1565_s28  ;;  %p1571_p12 = scmp.lt.s32.totalorder %s1565_s28, %s1565_s28 }
  0x3b   :  { %1199 = vmatprep.subr.bf16.mxu0 %v1684_v9  ;;  %1231 = vmatprep.subr.bf16.mxu1 %v1684_v9  ;;  %v1697_v20 = vpack.c.bf16 %v70_v17, %v69_v16  ;;  %v1701_v21 = vpack.c.bf16 %v88_v19, %v87_v18  ;;  %v71_v22 = vld [vmem:[#allocation7 + $0x30] sm:$0xff]  ;;  %v72_v23 = vld [vmem:[#allocation7 + $0x38] sm:$0xff]  ;;  %v89_v24 = vld [vmem:[#allocation7 + $0xc0] sm:$0xff] }
  0x3c   :  { %v90_v25 = vld [vmem:[#allocation7 + $0xc8] sm:$0xff]  ;;  %v1705_v26 = vpack.c.bf16 %v72_v23, %v71_v22  ;;  %v73_v28 = vld [vmem:[#allocation7 + $0x40] sm:$0xff]  ;;  %v91_v30 = vld [vmem:[#allocation7 + $0xd0] sm:$0xff]  ;;  %p1572_p13 = por %p1571_p12, %p1570_p11 }
  0x3d   :  { %v1709_v27 = vpack.c.bf16 %v90_v25, %v89_v24  ;;  %v74_v29 = vld [vmem:[#allocation7 + $0x48] sm:$0xff]  ;;  %v92_v31 = vld [vmem:[#allocation7 + $0xd8] sm:$0xff]  ;;  %v75_v34 = vld [vmem:[#allocation7 + $0x50] sm:$0xff] }
  0x3e   :  { %1201 = vmatpush3.bf16.msra.mxu0 %v1689_v14  ;;  %1233 = vmatpush3.bf16.msra.mxu1 %v1689_v14  ;;  %v1713_v32 = vpack.c.bf16 %v74_v29, %v73_v28  ;;  %v1717_v33 = vpack.c.bf16 %v92_v31, %v91_v30  ;;  %v76_v35 = vld [vmem:[#allocation7 + $0x58] sm:$0xff]  ;;  %v93_v36 = vld [vmem:[#allocation7 + $0xe0] sm:$0xff]  ;;  %v94_v37 = vld [vmem:[#allocation7 + $0xe8] sm:$0xff]  ;;  %p1573_p0 = pnand %p1572_p13, %p1566_p10 }
  0x3f   :  { %1203 = vmatprep.subr.bf16.mxu0 %v1693_v15  ;;  %1235 = vmatprep.subr.bf16.mxu1 %v1693_v15  ;;  %v1721_v38 = vpack.c.bf16 %v76_v35, %v75_v34  ;;  %v1725_v39 = vpack.c.bf16 %v94_v37, %v93_v36  ;;  %v77_v40 = vld [vmem:[#allocation7 + $0x60] sm:$0xff]  ;;  %v78_v41 = vld [vmem:[#allocation7 + $0x68] sm:$0xff]  ;;  %v95_v42 = vld [vmem:[#allocation7 + $0xf0] sm:$0xff] }
  0x40   :  { %v96_v43 = vld [vmem:[#allocation7 + $0xf8] sm:$0xff]  ;;  %v1729_v44 = vpack.c.bf16 %v78_v41, %v77_v40  ;;  %v79_v46 = vld [vmem:[#allocation7 + $0x70] sm:$0xff]  ;;  %v99_v50 = vld [vmem:[#allocation4] sm:$0xff] }
  0x41   :  { %v1733_v45 = vpack.c.bf16 %v96_v43, %v95_v42  ;;  %v80_v47 = vld [vmem:[#allocation7 + $0x78] sm:$0xff]  ;;  %v180_v58 = vld [vmem:[#allocation4 + $0x8] sm:$0xff]  ;;  %v261_v12 = vld [vmem:[#allocation4 + $0x10] sm:$0xff] }
  0x42   :  { %1205 = vmatpush3.bf16.msra.mxu0 %v1697_v20  ;;  %1237 = vmatpush3.bf16.msra.mxu1 %v1697_v20  ;;  %v1737_v48 = vpack.c.bf16 %v80_v47, %v79_v46  ;;  %v342_v34 = vld [vmem:[#allocation4 + $0x18] sm:$0xff] }
  0x43   :  { %1207 = vmatprep.subr.bf16.mxu0 %v1701_v21  ;;  %1239 = vmatprep.subr.bf16.mxu1 %v1701_v21 }
  0x46   :  { %1209 = vmatpush3.bf16.msra.mxu0 %v1705_v26  ;;  %1241 = vmatpush3.bf16.msra.mxu1 %v1705_v26 }
  0x47   :  { %1211 = vmatprep.subr.bf16.mxu0 %v1709_v27  ;;  %1243 = vmatprep.subr.bf16.mxu1 %v1709_v27 }
  0x4a   :  { %1213 = vmatpush3.bf16.msra.mxu0 %v1713_v32  ;;  %1245 = vmatpush3.bf16.msra.mxu1 %v1713_v32 }
  0x4b   :  { %1215 = vmatprep.subr.bf16.mxu0 %v1717_v33  ;;  %1247 = vmatprep.subr.bf16.mxu1 %v1717_v33 }
  0x4e   :  { %1217 = vmatpush3.bf16.msra.mxu0 %v1721_v38  ;;  %1249 = vmatpush3.bf16.msra.mxu1 %v1721_v38 }
  0x4f   :  { %1219 = vmatprep.subr.bf16.mxu0 %v1725_v39  ;;  %1251 = vmatprep.subr.bf16.mxu1 %v1725_v39 }
  0x52   :  { %1221 = vmatpush3.bf16.msra.mxu0 %v1729_v44  ;;  %1253 = vmatpush3.bf16.msra.mxu1 %v1729_v44 }
  0x53   :  { %1223 = vmatprep.subr.bf16.mxu0 %v1733_v45  ;;  %1255 = vmatprep.subr.bf16.mxu1 %v1733_v45 }
  0x56   :  { %1225 = vmatpush3.bf16.msra.mxu0 %v1737_v48  ;;  %1257 = vmatpush3.bf16.msra.mxu1 %v1737_v48 }
  0x57   :  { %1259 = vmatprep.subr.bf16.mxu0 %v1680_v4  ;;  %1291 = vmatprep.subr.bf16.mxu1 %v1680_v4 }
  0x59   :  { %165 = vmatmul.mubr.f32.vlgmr.msra.gmra.mrb[0].mxu0 %v1598_v0 }
  0x5a   :  { %1261 = vmatpush3.bf16.msra.mxu0 %v1682_v8 }
  0x5b   :  { %1263 = vmatprep.subr.bf16.mxu0 %v1684_v9 }
  0x5e   :  { %1265 = vmatpush3.bf16.msra.mxu0 %v1689_v14 }
  0x5f   :  { %1267 = vmatprep.subr.bf16.mxu0 %v1693_v15 }
  0x62   :  { %1269 = vmatpush3.bf16.msra.mxu0 %v1697_v20 }
  0x63   :  { %1271 = vmatprep.subr.bf16.mxu0 %v1701_v21 }
  0x66   :  { %1273 = vmatpush3.bf16.msra.mxu0 %v1705_v26 }
  0x67   :  { %1275 = vmatprep.subr.bf16.mxu0 %v1709_v27 }
  0x6a   :  { %1277 = vmatpush3.bf16.msra.mxu0 %v1713_v32 }
  0x6b   :  { %1279 = vmatprep.subr.bf16.mxu0 %v1717_v33 }
  0x6e   :  { %1281 = vmatpush3.bf16.msra.mxu0 %v1721_v38 }
  0x6f   :  { %1283 = vmatprep.subr.bf16.mxu0 %v1725_v39 }
  0x72   :  { %1285 = vmatpush3.bf16.msra.mxu0 %v1729_v44 }
  0x73   :  { %1287 = vmatprep.subr.bf16.mxu0 %v1733_v45 }
  0x76   :  { %1289 = vmatpush3.bf16.msra.mxu0 %v1737_v48 }
  0x77   :  { %1323 = vmatprep.subr.bf16.mxu0 %v1680_v4 }
 0x12c   :  { %v894_v49 = vpop.f32.mrb[0].mxu0 }
 0x12d   :  { %v895_v51 = vpop.f32.mrb[1].mxu0 }
 0x12e   :  { %v896_v52 = vadd.f32 %v895_v51, %v894_v49 }
 0x130   :  { %v167_v53 = vadd.f32 %v896_v52, %v99_v50  ;;  %v423_v52 = vld [vmem:[#allocation4 + $0x20] sm:$0xff] }
 0x132   :  { %1483 = vtanh.f32 %v167_v53 }
 0x13c   :  { %v1484_v54 = vpop.eup %1483 }
 0x13d   :  { %v175_v55 = vmul.f32 0.054, %v1484_v54 }
 0x13f   :  { %v177_v56 = vmul.f32 0.054, %v175_v55  ;;  %v254_v1 = vmul.f32 4.8, %v175_v55 }
 0x141   :  { %245 = vmatprep.mubr.f32.mxu1 %v177_v56  ;;  %v252_v62 = vmul.f32 4.9, %v177_v56 }
 0x142   :  { %246 = vmatmul.mubr.f32.vlgmr.msra.gmra.mrb[0].mxu1 %v175_v55 }
 0x143   :  { %1293 = vmatpush3.bf16.msra.mxu1 %v1682_v8 }
 0x144   :  { %1295 = vmatprep.subr.bf16.mxu1 %v1684_v9 }
 0x147   :  { %1297 = vmatpush3.bf16.msra.mxu1 %v1689_v14 }
 0x148   :  { %1299 = vmatprep.subr.bf16.mxu1 %v1693_v15 }
 0x14b   :  { %1301 = vmatpush3.bf16.msra.mxu1 %v1697_v20 }
 0x14c   :  { %1303 = vmatprep.subr.bf16.mxu1 %v1701_v21 }
 0x14f   :  { %1305 = vmatpush3.bf16.msra.mxu1 %v1705_v26 }
 0x150   :  { %1307 = vmatprep.subr.bf16.mxu1 %v1709_v27 }
 0x153   :  { %1309 = vmatpush3.bf16.msra.mxu1 %v1713_v32 }
 0x154   :  { %1311 = vmatprep.subr.bf16.mxu1 %v1717_v33 }
 0x157   :  { %1313 = vmatpush3.bf16.msra.mxu1 %v1721_v38 }
 0x158   :  { %1315 = vmatprep.subr.bf16.mxu1 %v1725_v39 }
 0x15b   :  { %1317 = vmatpush3.bf16.msra.mxu1 %v1729_v44 }
 0x15c   :  { %1319 = vmatprep.subr.bf16.mxu1 %v1733_v45 }
 0x15f   :  { %1321 = vmatpush3.bf16.msra.mxu1 %v1737_v48 }
 0x160   :  { %1355 = vmatprep.subr.bf16.mxu1 %v1680_v4 }
 0x215   :  { %v929_v57 = vpop.f32.mrb[0].mxu1 }
 0x216   :  { %v930_v59 = vpop.f32.mrb[1].mxu1 }
 0x217   :  { %v931_v60 = vadd.f32 %v930_v59, %v929_v57 }
 0x219   :  { %v248_v61 = vadd.f32 %v931_v60, %v180_v58 }
 0x21b   :  { %1485 = vtanh.f32 %v248_v61 }
 0x225   :  { %v1486_v63 = vpop.eup %1485 }
 0x226   :  { %v253_v2 = vsub.f32 %v1486_v63, %v252_v62 }
 0x228   :  { %v255_v3 = vsub.f32 %v253_v2, %v254_v1 }
 0x22a   :  { %v256_v5 = vmul.f32 0.054, %v255_v3 }
 0x22c   :  { %v257_v6 = vadd.f32 %v256_v5, %v175_v55 }
 0x22e   :  { %v258_v7 = vmul.f32 0.054, %v257_v6  ;;  %v335_v23 = vmul.f32 4.8, %v257_v6 }
 0x230   :  { %v259_v10 = vadd.f32 %v258_v7, %v177_v56  ;;  %v585_v7 = vld [vmem:[#allocation4 + $0x30] sm:$0xff] }
 0x232   :  { %326 = vmatprep.mubr.f32.mxu0 %v259_v10  ;;  %v333_v18 = vmul.f32 4.9, %v259_v10 }
 0x233   :  { %327 = vmatmul.mubr.f32.vlgmr.msra.gmra.mrb[2].mxu0 %v257_v6 }
 0x234   :  { %1325 = vmatpush3.bf16.msra.mxu0 %v1682_v8 }
 0x235   :  { %1327 = vmatprep.subr.bf16.mxu0 %v1684_v9 }
 0x238   :  { %1329 = vmatpush3.bf16.msra.mxu0 %v1689_v14 }
 0x239   :  { %1331 = vmatprep.subr.bf16.mxu0 %v1693_v15 }
 0x23c   :  { %1333 = vmatpush3.bf16.msra.mxu0 %v1697_v20 }
 0x23d   :  { %1335 = vmatprep.subr.bf16.mxu0 %v1701_v21 }
 0x240   :  { %1337 = vmatpush3.bf16.msra.mxu0 %v1705_v26 }
 0x241   :  { %1339 = vmatprep.subr.bf16.mxu0 %v1709_v27 }
 0x244   :  { %1341 = vmatpush3.bf16.msra.mxu0 %v1713_v32 }
 0x245   :  { %1343 = vmatprep.subr.bf16.mxu0 %v1717_v33 }
 0x248   :  { %1345 = vmatpush3.bf16.msra.mxu0 %v1721_v38 }
 0x249   :  { %1347 = vmatprep.subr.bf16.mxu0 %v1725_v39 }
 0x24c   :  { %1349 = vmatpush3.bf16.msra.mxu0 %v1729_v44 }
 0x24d   :  { %1351 = vmatprep.subr.bf16.mxu0 %v1733_v45 }
 0x250   :  { %1353 = vmatpush3.bf16.msra.mxu0 %v1737_v48 }
 0x251   :  { %1387 = vmatprep.subr.bf16.mxu0 %v1680_v4 }
 0x306   :  { %v964_v11 = vpop.f32.mrb[2].mxu0 }
 0x307   :  { %v965_v13 = vpop.f32.mrb[3].mxu0 }
 0x308   :  { %v966_v16 = vadd.f32 %v965_v13, %v964_v11 }
 0x30a   :  { %v329_v17 = vadd.f32 %v966_v16, %v261_v12 }
 0x30c   :  { %1487 = vtanh.f32 %v329_v17 }
 0x316   :  { %v1488_v19 = vpop.eup %1487 }
 0x317   :  { %v334_v22 = vsub.f32 %v1488_v19, %v333_v18 }
 0x319   :  { %v336_v24 = vsub.f32 %v334_v22, %v335_v23 }
 0x31b   :  { %v337_v25 = vmul.f32 0.054, %v336_v24 }
 0x31d   :  { %v338_v28 = vadd.f32 %v337_v25, %v257_v6 }
 0x31f   :  { %v339_v29 = vmul.f32 0.054, %v338_v28  ;;  %v416_v43 = vmul.f32 4.8, %v338_v28 }
 0x321   :  { %v340_v30 = vadd.f32 %v339_v29, %v259_v10  ;;  %v754_v29 = vld [vmem:[#allocation9 + $0x18] sm:$0xff] }
 0x323   :  { %407 = vmatprep.mubr.f32.mxu1 %v340_v30  ;;  %v414_v40 = vmul.f32 4.9, %v340_v30 }
 0x324   :  { %408 = vmatmul.mubr.f32.vlgmr.msra.gmra.mrb[2].mxu1 %v338_v28 }
 0x325   :  { %1357 = vmatpush3.bf16.msra.mxu1 %v1682_v8 }
 0x326   :  { %1359 = vmatprep.subr.bf16.mxu1 %v1684_v9 }
 0x329   :  { %1361 = vmatpush3.bf16.msra.mxu1 %v1689_v14 }
 0x32a   :  { %1363 = vmatprep.subr.bf16.mxu1 %v1693_v15 }
 0x32d   :  { %1365 = vmatpush3.bf16.msra.mxu1 %v1697_v20 }
 0x32e   :  { %1367 = vmatprep.subr.bf16.mxu1 %v1701_v21 }
 0x331   :  { %1369 = vmatpush3.bf16.msra.mxu1 %v1705_v26 }
 0x332   :  { %1371 = vmatprep.subr.bf16.mxu1 %v1709_v27 }
 0x335   :  { %1373 = vmatpush3.bf16.msra.mxu1 %v1713_v32 }
 0x336   :  { %1375 = vmatprep.subr.bf16.mxu1 %v1717_v33 }
 0x339   :  { %1377 = vmatpush3.bf16.msra.mxu1 %v1721_v38 }
 0x33a   :  { %1379 = vmatprep.subr.bf16.mxu1 %v1725_v39 }
 0x33d   :  { %1381 = vmatpush3.bf16.msra.mxu1 %v1729_v44 }
 0x33e   :  { %1383 = vmatprep.subr.bf16.mxu1 %v1733_v45 }
 0x341   :  { %1385 = vmatpush3.bf16.msra.mxu1 %v1737_v48 }
 0x342   :  { %1419 = vmatprep.subr.bf16.mxu1 %v1680_v4 }
 0x3f7   :  { %v999_v31 = vpop.f32.mrb[2].mxu1 }
 0x3f8   :  { %v1000_v35 = vpop.f32.mrb[3].mxu1 }
 0x3f9   :  { %v1001_v36 = vadd.f32 %v1000_v35, %v999_v31  ;;  %v755_v31 = vld [vmem:[#allocation9 + $0x20] sm:$0xff] }
 0x3fb   :  { %v410_v37 = vadd.f32 %v1001_v36, %v342_v34  ;;  %v756_v34 = vld [vmem:[#allocation9 + $0x28] sm:$0xff]  ;;  %v757_v36 = vld [vmem:[#allocation9 + $0x30] sm:$0xff] }
 0x3fc   :  { %v1457_v35 = vpack.c.bf16 %v756_v34, %v755_v31 }
 0x3fd   :  { %1489 = vtanh.f32 %v410_v37  ;;  %v758_v37 = vld [vmem:[#allocation9 + $0x38] sm:$0xff] }
 0x407   :  { %v1490_v41 = vpop.eup %1489 }
 0x408   :  { %v415_v42 = vsub.f32 %v1490_v41, %v414_v40  ;;  %v1460_v40 = vpack.c.bf16 %v758_v37, %v757_v36  ;;  %v759_v41 = vld [vmem:[#allocation9 + $0x40] sm:$0xff] }
 0x40a   :  { %v417_v46 = vsub.f32 %v415_v42, %v416_v43  ;;  %v760_v42 = vld [vmem:[#allocation9 + $0x48] sm:$0xff] }
 0x40b   :  { %v1463_v43 = vpack.c.bf16 %v760_v42, %v759_v41 }
 0x40c   :  { %v418_v47 = vmul.f32 0.054, %v417_v46  ;;  %v761_v46 = vld [vmem:[#allocation9 + $0x50] sm:$0xff] }
 0x40e   :  { %v419_v49 = vadd.f32 %v418_v47, %v338_v28  ;;  %v753_v28 = vld [vmem:[#allocation9 + $0x10] sm:$0xff]  ;;  %v762_v47 = vld [vmem:[#allocation9 + $0x58] sm:$0xff] }
 0x410   :  { %v420_v50 = vmul.f32 0.054, %v419_v49  ;;  %v497_v59 = vmul.f32 4.8, %v419_v49 }
 0x412   :  { %v421_v51 = vadd.f32 %v420_v50, %v340_v30  ;;  %v1454_v30 = vpack.c.bf16 %v754_v29, %v753_v28  ;;  %v763_v50 = vld [vmem:[#allocation9 + $0x60] sm:$0xff] }
 0x414   :  { %488 = vmatprep.mubr.f32.mxu0 %v421_v51  ;;  %v495_v56 = vmul.f32 4.9, %v421_v51 }
 0x415   :  { %489 = vmatmul.mubr.f32.vlgmr.msra.gmra.mrb[4].mxu0 %v419_v49 }
 0x416   :  { %1389 = vmatpush3.bf16.msra.mxu0 %v1682_v8 }
 0x417   :  { %1391 = vmatprep.subr.bf16.mxu0 %v1684_v9 }
 0x41a   :  { %1393 = vmatpush3.bf16.msra.mxu0 %v1689_v14 }
 0x41b   :  { %1395 = vmatprep.subr.bf16.mxu0 %v1693_v15 }
 0x41e   :  { %1397 = vmatpush3.bf16.msra.mxu0 %v1697_v20 }
 0x41f   :  { %1399 = vmatprep.subr.bf16.mxu0 %v1701_v21 }
 0x422   :  { %1401 = vmatpush3.bf16.msra.mxu0 %v1705_v26 }
 0x423   :  { %1403 = vmatprep.subr.bf16.mxu0 %v1709_v27 }
 0x426   :  { %1405 = vmatpush3.bf16.msra.mxu0 %v1713_v32 }
 0x427   :  { %1407 = vmatprep.subr.bf16.mxu0 %v1717_v33 }
 0x42a   :  { %1409 = vmatpush3.bf16.msra.mxu0 %v1721_v38 }
 0x42b   :  { %1411 = vmatprep.subr.bf16.mxu0 %v1725_v39 }
 0x42e   :  { %1413 = vmatpush3.bf16.msra.mxu0 %v1729_v44 }
 0x42f   :  { %1415 = vmatprep.subr.bf16.mxu0 %v1733_v45 }
 0x432   :  { %1417 = vmatpush3.bf16.msra.mxu0 %v1737_v48 }
 0x4e8   :  { %v1034_v4 = vpop.f32.mrb[4].mxu0 }
 0x4e9   :  { %v1035_v53 = vpop.f32.mrb[5].mxu0 }
 0x4ea   :  { %v1036_v54 = vadd.f32 %v1035_v53, %v1034_v4  ;;  %v766_v53 = vld [vmem:[#allocation9 + $0x78] sm:$0xff] }
 0x4ec   :  { %v491_v55 = vadd.f32 %v1036_v54, %v423_v52  ;;  %v765_v52 = vld [vmem:[#allocation9 + $0x70] sm:$0xff] }
 0x4ed   :  { %v1472_v54 = vpack.c.bf16 %v766_v53, %v765_v52 }
 0x4ee   :  { %1491 = vtanh.f32 %v491_v55 }
 0x4f8   :  { %v1492_v57 = vpop.eup %1491 }
 0x4f9   :  { %v496_v58 = vsub.f32 %v1492_v57, %v495_v56  ;;  %v666_v56 = vld [vmem:[#allocation4 + $0x38] sm:$0xff] }
 0x4fb   :  { %v498_v60 = vsub.f32 %v496_v58, %v497_v59 }
 0x4fd   :  { %v499_v61 = vmul.f32 0.054, %v498_v60 }
 0x4ff   :  { %v500_v62 = vadd.f32 %v499_v61, %v419_v49  ;;  %v1466_v49 = vpack.c.bf16 %v762_v47, %v761_v46 }
 0x501   :  { %v501_v63 = vmul.f32 0.054, %v500_v62 }
 0x503   :  { %v502_v1 = vadd.f32 %v501_v63, %v421_v51  ;;  %v764_v51 = vld [vmem:[#allocation9 + $0x68] sm:$0xff] }
 0x504   :  { %v1469_v4 = vpack.c.bf16 %v764_v51, %v763_v50 }
 0x505   :  { %569 = vmatprep.mubr.f32.mxu1 %v502_v1 }
 0x506   :  { %570 = vmatmul.mubr.f32.vlgmr.msra.gmra.mrb[4].mxu1 %v500_v62 }
 0x507   :  { %1421 = vmatpush3.bf16.msra.mxu1 %v1682_v8 }
 0x508   :  { %1423 = vmatprep.subr.bf16.mxu1 %v1684_v9  ;;  %v504_v9 = vld [vmem:[#allocation4 + $0x28] sm:$0xff] }
 0x50b   :  { %1425 = vmatpush3.bf16.msra.mxu1 %v1689_v14 }
 0x50c   :  { %1427 = vmatprep.subr.bf16.mxu1 %v1693_v15 }
 0x50f   :  { %1429 = vmatpush3.bf16.msra.mxu1 %v1697_v20 }
 0x510   :  { %1431 = vmatprep.subr.bf16.mxu1 %v1701_v21  ;;  %v576_v21 = vmul.f32 4.9, %v502_v1 }
 0x513   :  { %1433 = vmatpush3.bf16.msra.mxu1 %v1705_v26 }
 0x514   :  { %1435 = vmatprep.subr.bf16.mxu1 %v1709_v27 }
 0x517   :  { %1437 = vmatpush3.bf16.msra.mxu1 %v1713_v32  ;;  %v578_v32 = vmul.f32 4.8, %v500_v62 }
 0x518   :  { %1439 = vmatprep.subr.bf16.mxu1 %v1717_v33 }
 0x51b   :  { %1441 = vmatpush3.bf16.msra.mxu1 %v1721_v38 }
 0x51c   :  { %1443 = vmatprep.subr.bf16.mxu1 %v1725_v39 }
 0x51f   :  { %1445 = vmatpush3.bf16.msra.mxu1 %v1729_v44  ;;  %v751_v44 = vld [vmem:[#allocation9] sm:$0xff] }
 0x520   :  { %1447 = vmatprep.subr.bf16.mxu1 %v1733_v45  ;;  %v752_v45 = vld [vmem:[#allocation9 + $0x8] sm:$0xff] }
 0x521   :  { %v1451_v5 = vpack.c.bf16 %v752_v45, %v751_v44 }
 0x523   :  { %1449 = vmatpush3.bf16.msra.mxu1 %v1737_v48  ;;  %v1599_v48 = vmov 0.0|0.0  }
 0x524   :  { %1450 = vmatprep.subr.bf16.mxu0 %v1599_v48 }
 0x5d9   :  { %v1069_v8 = vpop.f32.mrb[4].mxu1 }
 0x5da   :  { %v1070_v14 = vpop.f32.mrb[5].mxu1 }
 0x5db   :  { %v1071_v15 = vadd.f32 %v1070_v14, %v1069_v8 }
 0x5dd   :  { %v572_v20 = vadd.f32 %v1071_v15, %v504_v9  ;;  %v861_v15 = vld [vmem:[%s1860_s3] ss:$0 sm:$0xff] }
 0x5df   :  { %1493 = vtanh.f32 %v572_v20 }
 0x5e9   :  { %v1494_v26 = vpop.eup %1493 }
 0x5ea   :  { %v577_v27 = vsub.f32 %v1494_v26, %v576_v21 }
 0x5ec   :  { %v579_v33 = vsub.f32 %v577_v27, %v578_v32 }
 0x5ee   :  { %v580_v38 = vmul.f32 0.054, %v579_v33 }
 0x5f0   :  { %v581_v2 = vadd.f32 %v580_v38, %v500_v62 }
 0x5f2   :  { %v582_v39 = vmul.f32 0.054, %v581_v2  ;;  %v659_v18 = vmul.f32 4.8, %v581_v2 }
 0x5f4   :  { %v583_v3 = vadd.f32 %v582_v39, %v502_v1 }
 0x5f6   :  { %650 = vmatprep.mubr.f32.mxu0 %v583_v3  ;;  %v657_v13 = vmul.f32 4.9, %v583_v3 }
 0x5f7   :  { %651 = vmatmul.mubr.f32.vlgmr.msra.gmra.mrb[6].mxu0 %v581_v2 }
 0x5f8   :  { %1452 = vmatpush3.bf16.msra.mxu0 %v1451_v5  ;;  %1191 = vmatprep.mubr.msk.f32.mxu0 %vm1600_vm0, %v1598_v0 }
 0x5f9   :  { %1453 = vmatprep.subr.bf16.mxu0 %v1599_v48 }
 0x5fc   :  { %1455 = vmatpush3.bf16.msra.mxu0 %v1454_v30 }
 0x5fd   :  { %1456 = vmatprep.subr.bf16.mxu0 %v1599_v48 }
 0x600   :  { %1458 = vmatpush3.bf16.msra.mxu0 %v1457_v35 }
 0x601   :  { %1459 = vmatprep.subr.bf16.mxu0 %v1599_v48 }
 0x604   :  { %1461 = vmatpush3.bf16.msra.mxu0 %v1460_v40 }
 0x605   :  { %1462 = vmatprep.subr.bf16.mxu0 %v1599_v48 }
 0x608   :  { %1464 = vmatpush3.bf16.msra.mxu0 %v1463_v43 }
 0x609   :  { %1465 = vmatprep.subr.bf16.mxu0 %v1599_v48 }
 0x60c   :  { %1467 = vmatpush3.bf16.msra.mxu0 %v1466_v49 }
 0x60d   :  { %1468 = vmatprep.subr.bf16.mxu0 %v1599_v48 }
 0x610   :  { %1470 = vmatpush3.bf16.msra.mxu0 %v1469_v4 }
 0x611   :  { %1471 = vmatprep.subr.bf16.mxu0 %v1599_v48 }
 0x614   :  { %1473 = vmatpush3.bf16.msra.mxu0 %v1472_v54 }
 0x6ca   :  { %v1104_v6 = vpop.f32.mrb[6].mxu0 }
 0x6cb   :  { %v1105_v10 = vpop.f32.mrb[7].mxu0 }
 0x6cc   :  { %v1106_v11 = vadd.f32 %v1105_v10, %v1104_v6 }
 0x6ce   :  { %v653_v12 = vadd.f32 %v1106_v11, %v585_v7 }
 0x6d0   :  { %1495 = vtanh.f32 %v653_v12 }
 0x6da   :  { %v1496_v16 = vpop.eup %1495 }
 0x6db   :  { %v658_v17 = vsub.f32 %v1496_v16, %v657_v13 }
 0x6dd   :  { %v660_v19 = vsub.f32 %v658_v17, %v659_v18 }
 0x6df   :  { %v661_v22 = vmul.f32 0.054, %v660_v19 }
 0x6e1   :  { %v662_v23 = vadd.f32 %v661_v22, %v581_v2 }
 0x6e3   :  { %v663_v24 = vmul.f32 0.054, %v662_v23  ;;  %v740_v63 = vmul.f32 4.8, %v662_v23 }
 0x6e5   :  { %v664_v25 = vadd.f32 %v663_v24, %v583_v3 }
 0x6e7   :  { %731 = vmatprep.mubr.f32.mxu1 %v664_v25  ;;  %v738_v60 = vmul.f32 4.9, %v664_v25 }
 0x6e8   :  { %732 = vmatmul.mubr.f32.vlgmr.msra.gmra.mrb[6].mxu1 %v662_v23 }
 0x7bb   :  { %v1139_v55 = vpop.f32.mrb[6].mxu1 }
 0x7bc   :  { %v1140_v57 = vpop.f32.mrb[7].mxu1 }
 0x7bd   :  { %v1141_v58 = vadd.f32 %v1140_v57, %v1139_v55 }
 0x7bf   :  { %v734_v59 = vadd.f32 %v1141_v58, %v666_v56 }
 0x7c1   :  { %1497 = vtanh.f32 %v734_v59 }
 0x7cb   :  { %v1498_v61 = vpop.eup %1497 }
 0x7cc   :  { %v739_v62 = vsub.f32 %v1498_v61, %v738_v60 }
 0x7ce   :  { %v741_v1 = vsub.f32 %v739_v62, %v740_v63 }
 0x7d0   :  { %v742_v8 = vmul.f32 0.054, %v741_v1 }
 0x7d2   :  { %v743_v0 = vadd.f32 %v742_v8, %v662_v23 }
 0x7d4   :  { %v744_v9 = vmul.f32 0.054, %v743_v0 }
 0x7d6   :  { %v745_v14 = vadd.f32 %v744_v9, %v664_v25 }
 0x7d8   :  { %1192 = vmatmul.mubr.f32.vlgmr.msra.gmra.mrb[8].mxu0 %v745_v14 }
 0x8ab   :  { %v840_v20 = vpop.f32.mrb[8].mxu0 }
 0x8ac   :  { %v841_v21 = vadd.f32 %v861_v15, %v840_v20  ;;  %v1193_v26 = vpop.f32.mrb[9].mxu0 }
 0x8ae   :  { %844 = vst [vmem:[#allocation10] sm:$0xff] %v841_v21 }
 0x8af   :  { %1576 = shalt.err (!%p1573_p0)
}
 0x8b0   :  { %s1577_s5 = scalar_lea.hbm %s1861_s4, 128 }
 0x8b1   :  { %p1578_p1 = scmp.ne.s32.totalorder %s1861_s4, %s1577_s5  ;;  %p1581_p2 = scmp.lt.u32.totalorder %s1577_s5, %s1861_s4 }
 0x8b3   :  { %p1583_p3 = pnand %p1581_p2, %p1578_p1 }
 0x8b5   :  { %1586 = shalt.err (!%p1583_p3)
}
 0x8b6   :  { %854 = dma.vmem_to_hbm [thread:$0]  %s852_s27, 128, %s1861_s4, [#allocation6]  }
 0x8b7   :  { %1591 = dma.done.wait [#allocation6], 128  }
 0x8b8   :  { %1592 = vsyncadd [#allocation6], 4294967168 }
 0x8b9   :  { %858 = vsyncpa [#allocation5], 1 }
 0x8ba   :  { %859 = vsyncpa [#allocation8], 1 }
 0x8bb   :  { %860 = vsyncpa [#allocation6], 1 }

</bundles_post_ra>
